<compile_context>
chip_gen: v5e
topology: v5e:2x2
jax: 0.10.0
libtpu: 0.0.40
codegen_flags: <defaults>
</compile_context>

<pallas_src>
import jax
import jax.numpy as jnp
from jax.experimental import pallas as pl
from jax.experimental.pallas import tpu as pltpu

INPUT_DIM = 4
HIDDEN_DIM = 32          # small hidden_dim for the test (module default is 128)
OUT_DIM = 256
BN_EPS = 1e-5
MAX_TB = 1024            # cap on rows per grid step (VMEM footprint stays ~2 MiB)


def _round_up(n, m):
    return (n + m - 1) // m * m


def _voxelnet_kernel(x_ref,
                     w1_ref, b1_ref, w2_ref, b2_ref,
                     wc1_ref, bc1_ref,
                     wc2_ref, bc2_ref,
                     wc3_ref, bc3_ref,
                     wfc_ref, bfc_ref,
                     o_ref):
    # --- VFE layer 1: Linear(4 -> h) + ReLU.
    # K=4 badly underfills the 128/256-deep MXU, so compute it as 4 VPU
    # broadcast-FMAs (frees MXU push/drain latency; all f32 on the VPU). ---
    x = x_ref[...]                      # (tb, 4)  f32
    w1 = w1_ref[...]                    # (4, h)   f32
    h = b1_ref[...] + x[:, 0:1] * w1[0:1, :]
    for k in range(1, INPUT_DIM):
        h = h + x[:, k:k + 1] * w1[k:k + 1, :]
    h = jnp.maximum(h, 0.0)

    def mxu_layer(a, w_ref, b_ref, relu=True):
        # bf16 MXU operands, f32 accumulation, f32 bias/ReLU.
        y = jnp.dot(a.astype(jnp.bfloat16), w_ref[...],
                    preferred_element_type=jnp.float32) + b_ref[...]
        return jnp.maximum(y, 0.0) if relu else y

    # --- VFE layer 2: Linear(h -> h) + ReLU ---
    h = mxu_layer(h, w2_ref, b2_ref)
    # --- middle_conv: 3x3x3 Conv3d on a 1x1x1 volume == center-tap matmul;
    #     eval-mode BN already folded into wc*/bc*.  ReLU after each. ---
    h = mxu_layer(h, wc1_ref, bc1_ref)   # Conv3d(h   -> 2h, s1) + BN + ReLU
    h = mxu_layer(h, wc2_ref, bc2_ref)   # Conv3d(2h  -> 4h, s2) + BN + ReLU
    h = mxu_layer(h, wc3_ref, bc3_ref)   # Conv3d(4h  -> 4h, s2) + BN + ReLU
    # --- mean over (D,H,W)=1x1x1 is identity; final fc (no ReLU) ---
    out = mxu_layer(h, wfc_ref, bfc_ref, relu=False)
    o_ref[...] = out.astype(o_ref.dtype)


def _const_spec(shape):
    # Whole-array block whose block index never changes across the (1-D) grid.
    nd = len(shape)
    return pl.BlockSpec(shape, lambda i, _nd=nd: (0,) * _nd)


def voxelnet_forward(x, kparams, *, tb=MAX_TB, out_dtype=jnp.bfloat16):
    """x: (B, INPUT_DIM) float32; kparams: dict of kernel-layout params.

    Returns (B, OUT_DIM) in `out_dtype` (default bf16; pass jnp.float32 to match the
    PyTorch module's output dtype exactly at the cost of 2x output HBM traffic).
    """
    B, fdim = x.shape
    assert fdim == INPUT_DIM, f"expected {INPUT_DIM} input features, got {fdim}"
    hidden = kparams["w1"].shape[1]

    # Batch tiling policy:
    #   * pad the batch only to the sublane grain (8),
    #   * pick >= 2 grid steps whenever B >= 16 (keeps both v7x TensorCores busy;
    #     costs one extra ~0.35 us grid step on v5e/v6e — negligible),
    #   * cap tiles at `tb` rows; the tile evenly divides the padded batch, so the
    #     extra padding is at most 8*(n_tiles-1) rows.
    b8 = _round_up(B, 8)
    n_tiles = max(pl.cdiv(b8, min(tb, MAX_TB)), 2 if b8 >= 16 else 1)
    tb_eff = _round_up(pl.cdiv(b8, n_tiles), 8)
    b_pad = n_tiles * tb_eff
    if b_pad != B:
        x = jnp.pad(x, ((0, b_pad - B), (0, 0)))

    ordered = [
        kparams["w1"], kparams["b1"], kparams["w2"], kparams["b2"],
        kparams["wc1"], kparams["bc1"],
        kparams["wc2"], kparams["bc2"],
        kparams["wc3"], kparams["bc3"],
        kparams["wfc"], kparams["bfc"],
    ]

    in_specs = [pl.BlockSpec((tb_eff, INPUT_DIM), lambda i: (i, 0))]
    in_specs += [_const_spec(p.shape) for p in ordered]

    # Advisory cost estimate for XLA's scheduler around the custom call.
    flops_per_row = 2 * (INPUT_DIM * hidden + hidden * hidden + hidden * 2 * hidden
                         + 2 * hidden * 4 * hidden + 4 * hidden * 4 * hidden
                         + 4 * hidden * OUT_DIM)
    weight_bytes = sum(int(p.size) * p.dtype.itemsize for p in ordered)
    cost = pl.CostEstimate(
        flops=flops_per_row * b_pad,
        transcendentals=0,
        bytes_accessed=b_pad * (INPUT_DIM * 4
                                + OUT_DIM * jnp.dtype(out_dtype).itemsize)
        + weight_bytes)

    out = pl.pallas_call(
        _voxelnet_kernel,
        out_shape=jax.ShapeDtypeStruct((b_pad, OUT_DIM), out_dtype),
        grid=(n_tiles,),
        in_specs=in_specs,
        out_specs=pl.BlockSpec((tb_eff, OUT_DIM), lambda i: (i, 0)),
        compiler_params=pltpu.CompilerParams(dimension_semantics=("parallel",)),
        cost_estimate=cost,
    )(x, *ordered)

    return out[:B] if b_pad != B else out


def init_raw_params(key, input_dim=INPUT_DIM, hidden_dim=HIDDEN_DIM):
    """Deterministic synthetic parameters in PyTorch layouts (all float32)."""
    ks = jax.random.split(key, 12)
    h, h2, h4 = hidden_dim, 2 * hidden_dim, 4 * hidden_dim

    def rnd(k, shape, scale=0.05):
        return (scale * jax.random.normal(k, shape)).astype(jnp.float32)

    raw = {
        # Linear weights are (out, in); conv weights are (out, in, 3, 3, 3).
        "vfe0_w": rnd(ks[0], (h, input_dim)), "vfe0_b": rnd(ks[1], (h,)),
        "vfe2_w": rnd(ks[2], (h, h)),         "vfe2_b": rnd(ks[3], (h,)),
        "c1_w": rnd(ks[4], (h2, h, 3, 3, 3)),  "c1_b": rnd(ks[5], (h2,)),
        "c2_w": rnd(ks[6], (h4, h2, 3, 3, 3)), "c2_b": rnd(ks[7], (h4,)),
        "c3_w": rnd(ks[8], (h4, h4, 3, 3, 3)), "c3_b": rnd(ks[9], (h4,)),
        "fc_w": rnd(ks[10], (OUT_DIM, h4)),    "fc_b": rnd(ks[11], (OUT_DIM,)),
    }
    # BatchNorm3d defaults (eval mode): gamma=1, beta=0, running_mean=0, running_var=1
    for name, c in (("bn1", h2), ("bn2", h4), ("bn3", h4)):
        raw[f"{name}_g"] = jnp.ones((c,), jnp.float32)
        raw[f"{name}_b"] = jnp.zeros((c,), jnp.float32)
        raw[f"{name}_m"] = jnp.zeros((c,), jnp.float32)
        raw[f"{name}_v"] = jnp.ones((c,), jnp.float32)
    return raw


def to_kernel_params(raw):
    """Fold PyTorch layouts into kernel layouts.

    Linear/Conv W -> (in, out); Conv3d -> center tap (valid because the post-view
    spatial volume is exactly 1x1x1 in this module); eval-mode BN folded into the
    conv weight/bias; biases -> (1, out) f32.  MXU weights are bf16; the first VFE
    weight stays f32 for the VPU FMA path.
    """

    def fold_conv_bn(conv_w, conv_b, bn):
        assert conv_w.shape[2:] == (3, 3, 3)
        g, beta = raw[f"{bn}_g"], raw[f"{bn}_b"]
        m, v = raw[f"{bn}_m"], raw[f"{bn}_v"]
        s = g / jnp.sqrt(v + BN_EPS)                      # per-out-channel scale
        w = conv_w[:, :, 1, 1, 1].T * s[None, :]          # (in, out), BN folded
        b = (conv_b - m) * s + beta
        return w.astype(jnp.bfloat16), b[None, :].astype(jnp.float32)

    wc1, bc1 = fold_conv_bn(raw["c1_w"], raw["c1_b"], "bn1")
    wc2, bc2 = fold_conv_bn(raw["c2_w"], raw["c2_b"], "bn2")
    wc3, bc3 = fold_conv_bn(raw["c3_w"], raw["c3_b"], "bn3")

    return {
        "w1": raw["vfe0_w"].T.astype(jnp.float32),        # (4, h), f32 for the VPU path
        "b1": raw["vfe0_b"][None, :].astype(jnp.float32),
        "w2": raw["vfe2_w"].T.astype(jnp.bfloat16),
        "b2": raw["vfe2_b"][None, :].astype(jnp.float32),
        "wc1": wc1, "bc1": bc1,
        "wc2": wc2, "bc2": bc2,
        "wc3": wc3, "bc3": bc3,
        "wfc": raw["fc_w"].T.astype(jnp.bfloat16),
        "bfc": raw["fc_b"][None, :].astype(jnp.float32),
    }


def reference_forward(x, raw):
    """Literal JAX port of the PyTorch forward (real 3D convs, padding, strides), f32."""
    h = jax.nn.relu(x @ raw["vfe0_w"].T + raw["vfe0_b"])
    h = jax.nn.relu(h @ raw["vfe2_w"].T + raw["vfe2_b"])
    v = h.reshape(h.shape[0], -1, 1, 1, 1)  # NCDHW

    def conv_bn_relu(v, w, b, name, stride):
        y = jax.lax.conv_general_dilated(
            v, w, window_strides=(stride,) * 3, padding=[(1, 1)] * 3,
            dimension_numbers=("NCDHW", "OIDHW", "NCDHW"))
        y = y + b.reshape(1, -1, 1, 1, 1)
        g = raw[f"{name}_g"].reshape(1, -1, 1, 1, 1)
        bb = raw[f"{name}_b"].reshape(1, -1, 1, 1, 1)
        m = raw[f"{name}_m"].reshape(1, -1, 1, 1, 1)
        var = raw[f"{name}_v"].reshape(1, -1, 1, 1, 1)
        y = (y - m) / jnp.sqrt(var + BN_EPS) * g + bb
        return jax.nn.relu(y)

    v = conv_bn_relu(v, raw["c1_w"], raw["c1_b"], "bn1", 1)
    v = conv_bn_relu(v, raw["c2_w"], raw["c2_b"], "bn2", 2)
    v = conv_bn_relu(v, raw["c3_w"], raw["c3_b"], "bn3", 2)
    f = jnp.mean(v, axis=(2, 3, 4))
    return f @ raw["fc_w"].T + raw["fc_b"]


if __name__ == "__main__":
    key = jax.random.PRNGKey(0)
    kx, kp = jax.random.split(key)

    B = 8
    x = jax.random.normal(kx, (B, INPUT_DIM), dtype=jnp.float32)

    raw = init_raw_params(kp)
    kparams = to_kernel_params(raw)

    out = voxelnet_forward(x, kparams)          # default out_dtype=bf16, adaptive tiling
    out = jax.block_until_ready(out)

    ref = jax.block_until_ready(reference_forward(x, raw))
    assert out.shape == (B, OUT_DIM), out.shape
    # bf16 MXU operands + bf16 output (f32 accumulation): relaxed tolerance vs f32 ref.
    err = float(jnp.max(jnp.abs(out.astype(jnp.float32) - ref)))
    assert jnp.allclose(out.astype(jnp.float32), ref, atol=2e-2, rtol=2e-2), err

    print("KERNEL_OK")
</pallas_src>

<mosaic_0001>
module attributes {stable_mosaic.version = 11 : i64} {
  func.func @_voxelnet_kernel(%arg0: i32, %arg1: memref<8x4xf32, #tpu.memory_space<vmem>>, %arg2: memref<4x32xf32, #tpu.memory_space<vmem>>, %arg3: memref<1x32xf32, #tpu.memory_space<vmem>>, %arg4: memref<32x32xbf16, #tpu.memory_space<vmem>>, %arg5: memref<1x32xf32, #tpu.memory_space<vmem>>, %arg6: memref<32x64xbf16, #tpu.memory_space<vmem>>, %arg7: memref<1x64xf32, #tpu.memory_space<vmem>>, %arg8: memref<64x128xbf16, #tpu.memory_space<vmem>>, %arg9: memref<1x128xf32, #tpu.memory_space<vmem>>, %arg10: memref<128x128xbf16, #tpu.memory_space<vmem>>, %arg11: memref<1x128xf32, #tpu.memory_space<vmem>>, %arg12: memref<128x256xbf16, #tpu.memory_space<vmem>>, %arg13: memref<1x256xf32, #tpu.memory_space<vmem>>, %arg14: memref<8x256xbf16, #tpu.memory_space<vmem>>) attributes {dimension_semantics = [#tpu.dimension_semantics<parallel>], iteration_bounds = array<i64: 1>, scalar_prefetch = 0 : i64, scratch_operands = 0 : i64, tpu.core_type = #tpu.core_type<tc>, window_params = [{transform_indices = @transform_0, window_bounds = array<i64: 8, 4>}, {pipeline_mode = #tpu.pipeline_mode<synchronous>, transform_indices = @transform_1, window_bounds = array<i64: 4, 32>}, {pipeline_mode = #tpu.pipeline_mode<synchronous>, transform_indices = @transform_2, window_bounds = array<i64: 1, 32>}, {pipeline_mode = #tpu.pipeline_mode<synchronous>, transform_indices = @transform_3, window_bounds = array<i64: 32, 32>}, {pipeline_mode = #tpu.pipeline_mode<synchronous>, transform_indices = @transform_4, window_bounds = array<i64: 1, 32>}, {pipeline_mode = #tpu.pipeline_mode<synchronous>, transform_indices = @transform_5, window_bounds = array<i64: 32, 64>}, {pipeline_mode = #tpu.pipeline_mode<synchronous>, transform_indices = @transform_6, window_bounds = array<i64: 1, 64>}, {pipeline_mode = #tpu.pipeline_mode<synchronous>, transform_indices = @transform_7, window_bounds = array<i64: 64, 128>}, {pipeline_mode = #tpu.pipeline_mode<synchronous>, transform_indices = @transform_8, window_bounds = array<i64: 1, 128>}, {pipeline_mode = #tpu.pipeline_mode<synchronous>, transform_indices = @transform_9, window_bounds = array<i64: 128, 128>}, {pipeline_mode = #tpu.pipeline_mode<synchronous>, transform_indices = @transform_10, window_bounds = array<i64: 1, 128>}, {pipeline_mode = #tpu.pipeline_mode<synchronous>, transform_indices = @transform_11, window_bounds = array<i64: 128, 256>}, {pipeline_mode = #tpu.pipeline_mode<synchronous>, transform_indices = @transform_12, window_bounds = array<i64: 1, 256>}, {transform_indices = @transform_13, window_bounds = array<i64: 8, 256>}]} {
    %c0 = arith.constant 0 : index
    %c0_0 = arith.constant 0 : index
    %0 = vector.load %arg1[%c0, %c0_0] : memref<8x4xf32, #tpu.memory_space<vmem>>, vector<8x4xf32>
    %c0_1 = arith.constant 0 : index
    %c0_2 = arith.constant 0 : index
    %1 = vector.load %arg2[%c0_1, %c0_2] : memref<4x32xf32, #tpu.memory_space<vmem>>, vector<4x32xf32>
    %c0_3 = arith.constant 0 : index
    %c0_4 = arith.constant 0 : index
    %2 = vector.load %arg3[%c0_3, %c0_4] : memref<1x32xf32, #tpu.memory_space<vmem>>, vector<1x32xf32>
    %3 = vector.extract_strided_slice %0 {offsets = [0, 0], sizes = [8, 1], strides = [1, 1]} : vector<8x4xf32> to vector<8x1xf32>
    %4 = vector.extract_strided_slice %1 {offsets = [0, 0], sizes = [1, 32], strides = [1, 1]} : vector<4x32xf32> to vector<1x32xf32>
    %5 = vector.broadcast %3 : vector<8x1xf32> to vector<8x32xf32>
    %6 = vector.broadcast %4 : vector<1x32xf32> to vector<8x32xf32>
    %7 = arith.mulf %5, %6 : vector<8x32xf32>
    %8 = vector.broadcast %2 : vector<1x32xf32> to vector<8x32xf32>
    %9 = arith.addf %8, %7 : vector<8x32xf32>
    %10 = vector.extract_strided_slice %0 {offsets = [0, 1], sizes = [8, 1], strides = [1, 1]} : vector<8x4xf32> to vector<8x1xf32>
    %11 = vector.extract_strided_slice %1 {offsets = [1, 0], sizes = [1, 32], strides = [1, 1]} : vector<4x32xf32> to vector<1x32xf32>
    %12 = vector.broadcast %10 : vector<8x1xf32> to vector<8x32xf32>
    %13 = vector.broadcast %11 : vector<1x32xf32> to vector<8x32xf32>
    %14 = arith.mulf %12, %13 : vector<8x32xf32>
    %15 = arith.addf %9, %14 : vector<8x32xf32>
    %16 = vector.extract_strided_slice %0 {offsets = [0, 2], sizes = [8, 1], strides = [1, 1]} : vector<8x4xf32> to vector<8x1xf32>
    %17 = vector.extract_strided_slice %1 {offsets = [2, 0], sizes = [1, 32], strides = [1, 1]} : vector<4x32xf32> to vector<1x32xf32>
    %18 = vector.broadcast %16 : vector<8x1xf32> to vector<8x32xf32>
    %19 = vector.broadcast %17 : vector<1x32xf32> to vector<8x32xf32>
    %20 = arith.mulf %18, %19 : vector<8x32xf32>
    %21 = arith.addf %15, %20 : vector<8x32xf32>
    %22 = vector.extract_strided_slice %0 {offsets = [0, 3], sizes = [8, 1], strides = [1, 1]} : vector<8x4xf32> to vector<8x1xf32>
    %23 = vector.extract_strided_slice %1 {offsets = [3, 0], sizes = [1, 32], strides = [1, 1]} : vector<4x32xf32> to vector<1x32xf32>
    %24 = vector.broadcast %22 : vector<8x1xf32> to vector<8x32xf32>
    %25 = vector.broadcast %23 : vector<1x32xf32> to vector<8x32xf32>
    %26 = arith.mulf %24, %25 : vector<8x32xf32>
    %27 = arith.addf %21, %26 : vector<8x32xf32>
    %cst = arith.constant 0.000000e+00 : f32
    %28 = vector.broadcast %cst : f32 to vector<8x32xf32>
    %29 = arith.maximumf %27, %28 : vector<8x32xf32>
    %30 = arith.truncf %29 : vector<8x32xf32> to vector<8x32xbf16>
    %c0_5 = arith.constant 0 : index
    %c0_6 = arith.constant 0 : index
    %31 = vector.load %arg4[%c0_5, %c0_6] : memref<32x32xbf16, #tpu.memory_space<vmem>>, vector<32x32xbf16>
    %cst_7 = arith.constant dense<0.000000e+00> : vector<8x32xf32>
    %32 = tpu.matmul %30, %31, %cst_7 {dimension_numbers = #tpu.dot_dimension_numbers<[1], [0], [0], [1], [0, 0, 1, 1], [], []>} : vector<8x32xbf16>, vector<32x32xbf16>, vector<8x32xf32> -> vector<8x32xf32>
    %c0_8 = arith.constant 0 : index
    %c0_9 = arith.constant 0 : index
    %33 = vector.load %arg5[%c0_8, %c0_9] : memref<1x32xf32, #tpu.memory_space<vmem>>, vector<1x32xf32>
    %34 = vector.broadcast %33 : vector<1x32xf32> to vector<8x32xf32>
    %35 = arith.addf %32, %34 : vector<8x32xf32>
    %cst_10 = arith.constant 0.000000e+00 : f32
    %36 = vector.broadcast %cst_10 : f32 to vector<8x32xf32>
    %37 = arith.maximumf %35, %36 : vector<8x32xf32>
    %38 = arith.truncf %37 : vector<8x32xf32> to vector<8x32xbf16>
    %c0_11 = arith.constant 0 : index
    %c0_12 = arith.constant 0 : index
    %39 = vector.load %arg6[%c0_11, %c0_12] : memref<32x64xbf16, #tpu.memory_space<vmem>>, vector<32x64xbf16>
    %cst_13 = arith.constant dense<0.000000e+00> : vector<8x64xf32>
    %40 = tpu.matmul %38, %39, %cst_13 {dimension_numbers = #tpu.dot_dimension_numbers<[1], [0], [0], [1], [0, 0, 1, 1], [], []>} : vector<8x32xbf16>, vector<32x64xbf16>, vector<8x64xf32> -> vector<8x64xf32>
    %c0_14 = arith.constant 0 : index
    %c0_15 = arith.constant 0 : index
    %41 = vector.load %arg7[%c0_14, %c0_15] : memref<1x64xf32, #tpu.memory_space<vmem>>, vector<1x64xf32>
    %42 = vector.broadcast %41 : vector<1x64xf32> to vector<8x64xf32>
    %43 = arith.addf %40, %42 : vector<8x64xf32>
    %cst_16 = arith.constant 0.000000e+00 : f32
    %44 = vector.broadcast %cst_16 : f32 to vector<8x64xf32>
    %45 = arith.maximumf %43, %44 : vector<8x64xf32>
    %46 = arith.truncf %45 : vector<8x64xf32> to vector<8x64xbf16>
    %c0_17 = arith.constant 0 : index
    %c0_18 = arith.constant 0 : index
    %47 = vector.load %arg8[%c0_17, %c0_18] : memref<64x128xbf16, #tpu.memory_space<vmem>>, vector<64x128xbf16>
    %cst_19 = arith.constant dense<0.000000e+00> : vector<8x128xf32>
    %48 = tpu.matmul %46, %47, %cst_19 {dimension_numbers = #tpu.dot_dimension_numbers<[1], [0], [0], [1], [0, 0, 1, 1], [], []>} : vector<8x64xbf16>, vector<64x128xbf16>, vector<8x128xf32> -> vector<8x128xf32>
    %c0_20 = arith.constant 0 : index
    %c0_21 = arith.constant 0 : index
    %49 = vector.load %arg9[%c0_20, %c0_21] : memref<1x128xf32, #tpu.memory_space<vmem>>, vector<1x128xf32>
    %50 = vector.broadcast %49 : vector<1x128xf32> to vector<8x128xf32>
    %51 = arith.addf %48, %50 : vector<8x128xf32>
    %cst_22 = arith.constant 0.000000e+00 : f32
    %52 = vector.broadcast %cst_22 : f32 to vector<8x128xf32>
    %53 = arith.maximumf %51, %52 : vector<8x128xf32>
    %54 = arith.truncf %53 : vector<8x128xf32> to vector<8x128xbf16>
    %c0_23 = arith.constant 0 : index
    %c0_24 = arith.constant 0 : index
    %55 = vector.load %arg10[%c0_23, %c0_24] : memref<128x128xbf16, #tpu.memory_space<vmem>>, vector<128x128xbf16>
    %cst_25 = arith.constant dense<0.000000e+00> : vector<8x128xf32>
    %56 = tpu.matmul %54, %55, %cst_25 {dimension_numbers = #tpu.dot_dimension_numbers<[1], [0], [0], [1], [0, 0, 1, 1], [], []>} : vector<8x128xbf16>, vector<128x128xbf16>, vector<8x128xf32> -> vector<8x128xf32>
    %c0_26 = arith.constant 0 : index
    %c0_27 = arith.constant 0 : index
    %57 = vector.load %arg11[%c0_26, %c0_27] : memref<1x128xf32, #tpu.memory_space<vmem>>, vector<1x128xf32>
    %58 = vector.broadcast %57 : vector<1x128xf32> to vector<8x128xf32>
    %59 = arith.addf %56, %58 : vector<8x128xf32>
    %cst_28 = arith.constant 0.000000e+00 : f32
    %60 = vector.broadcast %cst_28 : f32 to vector<8x128xf32>
    %61 = arith.maximumf %59, %60 : vector<8x128xf32>
    %62 = arith.truncf %61 : vector<8x128xf32> to vector<8x128xbf16>
    %c0_29 = arith.constant 0 : index
    %c0_30 = arith.constant 0 : index
    %63 = vector.load %arg12[%c0_29, %c0_30] : memref<128x256xbf16, #tpu.memory_space<vmem>>, vector<128x256xbf16>
    %cst_31 = arith.constant dense<0.000000e+00> : vector<8x256xf32>
    %64 = tpu.matmul %62, %63, %cst_31 {dimension_numbers = #tpu.dot_dimension_numbers<[1], [0], [0], [1], [0, 0, 1, 1], [], []>} : vector<8x128xbf16>, vector<128x256xbf16>, vector<8x256xf32> -> vector<8x256xf32>
    %c0_32 = arith.constant 0 : index
    %c0_33 = arith.constant 0 : index
    %65 = vector.load %arg13[%c0_32, %c0_33] : memref<1x256xf32, #tpu.memory_space<vmem>>, vector<1x256xf32>
    %66 = vector.broadcast %65 : vector<1x256xf32> to vector<8x256xf32>
    %67 = arith.addf %64, %66 : vector<8x256xf32>
    %68 = arith.truncf %67 : vector<8x256xf32> to vector<8x256xbf16>
    %c0_34 = arith.constant 0 : index
    %c0_35 = arith.constant 0 : index
    %69 = vector.load %arg14[%c0_34, %c0_35] : memref<8x256xbf16, #tpu.memory_space<vmem>>, vector<8x256xbf16>
    tpu.vector_store %arg14[%c0_34, %c0_35], %68 {strides = array<i32>} : memref<8x256xbf16, #tpu.memory_space<vmem>>, vector<8x256xbf16>,
    return
  }
  func.func @transform_0(%arg0: i32) -> (i32, i32) {
    %c0_i32 = arith.constant 0 : i32
    %c0_i32_0 = arith.constant 0 : i32
    return %arg0, %c0_i32 : i32, i32
  }
  func.func @transform_1(%arg0: i32) -> (i32, i32) {
    %c0_i32 = arith.constant 0 : i32
    %c0_i32_0 = arith.constant 0 : i32
    %c0_i32_1 = arith.constant 0 : i32
    return %c0_i32, %c0_i32_0 : i32, i32
  }
  func.func @transform_2(%arg0: i32) -> (i32, i32) {
    %c0_i32 = arith.constant 0 : i32
    %c0_i32_0 = arith.constant 0 : i32
    %c0_i32_1 = arith.constant 0 : i32
    return %c0_i32, %c0_i32_0 : i32, i32
  }
  func.func @transform_3(%arg0: i32) -> (i32, i32) {
    %c0_i32 = arith.constant 0 : i32
    %c0_i32_0 = arith.constant 0 : i32
    %c0_i32_1 = arith.constant 0 : i32
    return %c0_i32, %c0_i32_0 : i32, i32
  }
  func.func @transform_4(%arg0: i32) -> (i32, i32) {
    %c0_i32 = arith.constant 0 : i32
    %c0_i32_0 = arith.constant 0 : i32
    %c0_i32_1 = arith.constant 0 : i32
    return %c0_i32, %c0_i32_0 : i32, i32
  }
  func.func @transform_5(%arg0: i32) -> (i32, i32) {
    %c0_i32 = arith.constant 0 : i32
    %c0_i32_0 = arith.constant 0 : i32
    %c0_i32_1 = arith.constant 0 : i32
    return %c0_i32, %c0_i32_0 : i32, i32
  }
  func.func @transform_6(%arg0: i32) -> (i32, i32) {
    %c0_i32 = arith.constant 0 : i32
    %c0_i32_0 = arith.constant 0 : i32
    %c0_i32_1 = arith.constant 0 : i32
    return %c0_i32, %c0_i32_0 : i32, i32
  }
  func.func @transform_7(%arg0: i32) -> (i32, i32) {
    %c0_i32 = arith.constant 0 : i32
    %c0_i32_0 = arith.constant 0 : i32
    %c0_i32_1 = arith.constant 0 : i32
    return %c0_i32, %c0_i32_0 : i32, i32
  }
  func.func @transform_8(%arg0: i32) -> (i32, i32) {
    %c0_i32 = arith.constant 0 : i32
    %c0_i32_0 = arith.constant 0 : i32
    %c0_i32_1 = arith.constant 0 : i32
    return %c0_i32, %c0_i32_0 : i32, i32
  }
  func.func @transform_9(%arg0: i32) -> (i32, i32) {
    %c0_i32 = arith.constant 0 : i32
    %c0_i32_0 = arith.constant 0 : i32
    %c0_i32_1 = arith.constant 0 : i32
    return %c0_i32, %c0_i32_0 : i32, i32
  }
  func.func @transform_10(%arg0: i32) -> (i32, i32) {
    %c0_i32 = arith.constant 0 : i32
    %c0_i32_0 = arith.constant 0 : i32
    %c0_i32_1 = arith.constant 0 : i32
    return %c0_i32, %c0_i32_0 : i32, i32
  }
  func.func @transform_11(%arg0: i32) -> (i32, i32) {
    %c0_i32 = arith.constant 0 : i32
    %c0_i32_0 = arith.constant 0 : i32
    %c0_i32_1 = arith.constant 0 : i32
    return %c0_i32, %c0_i32_0 : i32, i32
  }
  func.func @transform_12(%arg0: i32) -> (i32, i32) {
    %c0_i32 = arith.constant 0 : i32
    %c0_i32_0 = arith.constant 0 : i32
    %c0_i32_1 = arith.constant 0 : i32
    return %c0_i32, %c0_i32_0 : i32, i32
  }
  func.func @transform_13(%arg0: i32) -> (i32, i32) {
    %c0_i32 = arith.constant 0 : i32
    %c0_i32_0 = arith.constant 0 : i32
    return %arg0, %c0_i32 : i32, i32
  }
}

</mosaic_0001>

<bundles_post_ra>
// kernel: tpu_custom_call.1
= control target key start
LH: loop header
LB: loop body
LE: loop exit
PB: predicated region body
PF: predicated region fallthrough
CT: control target
= control target key end

     0   :  { %18 = vsyncpa [#allocation3], 0  ;;  %s1127_s0 = inlined_call_operand.vmem [shape: f32[8,4], index: 0, kind: input, shape index: {}]   ;;  %s1128_s1 = inlined_call_operand.hbm [shape: f32[4,32], index: 1, kind: input, shape index: {}]   ;;  %s1129_s2 = inlined_call_operand.hbm [shape: f32[1,32], index: 2, kind: input, shape index: {}]   ;;  %s1130_s3 = inlined_call_operand.hbm [shape: bf16[32,32], index: 3, kind: input, shape index: {}]   ;;  %s1131_s4 = inlined_call_operand.hbm [shape: f32[1,32], index: 4, kind: input, shape index: {}]   ;;  %s1132_s5 = inlined_call_operand.vmem [shape: bf16[32,64], index: 5, kind: input, shape index: {}]   ;;  %s1133_s6 = inlined_call_operand.hbm [shape: f32[1,64], index: 6, kind: input, shape index: {}]   ;;  %s1134_s7 = inlined_call_operand.hbm [shape: bf16[64,128], index: 7, kind: input, shape index: {}]   ;;  %s1135_s8 = inlined_call_operand.vmem [shape: f32[1,128], index: 8, kind: input, shape index: {}]   ;;  %s1136_s9 = inlined_call_operand.hbm [shape: bf16[128,128], index: 9, kind: input, shape index: {}]   ;;  %s1137_s10 = inlined_call_operand.vmem [shape: f32[1,128], index: 10, kind: input, shape index: {}]   ;;  %s1138_s11 = inlined_call_operand.hbm [shape: bf16[128,256], index: 11, kind: input, shape index: {}]   ;;  %s1139_s12 = inlined_call_operand.vmem [shape: f32[1,256], index: 12, kind: input, shape index: {}]   ;;  %s1140_s13 = inlined_call_operand.hbm [shape: bf16[8,256], index: 13, kind: output, shape index: {}]  }
   0x1   :  { %19 = vsyncpa [#allocation6], 0 }
   0x2   :  { %20 = vsyncpa [#allocation9], 0 }
   0x3   :  { %21 = vsyncpa [#allocation12], 0 }
   0x4   :  { %22 = vsyncpa [#allocation15], 0  ;;  %s42_s27 = sshll.u32 %s1129_s2, 4  ;;  %s43_s27 = int_to_ptr.hbm [resolvable:$true] %s42_s27 }
   0x5   :  { %23 = vsyncpa [#allocation4], 0  ;;  %s984_s28 = smov [#allocation5]   ;;  %s66_s15 = sshll.u32 %s1131_s4, 4  ;;  %s67_s15 = int_to_ptr.hbm [resolvable:$true] %s66_s15 }
   0x6   :  { %s44_s29 = sshll.u32 %s984_s28, 4  ;;  %s985_s16 = smov [#allocation8]   ;;  %s45_s29 = int_to_ptr.vmem [resolvable:$true] %s44_s29 }
   0x7   :  { %47 = dma.hbm_to_vmem [thread:$0]  %s43_s27, 16, %s45_s29, [#allocation6]  }
   0x8   :  { %s68_s17 = sshll.u32 %s985_s16, 4  ;;  %s89_s20 = sshll.u32 %s1134_s7, 4  ;;  %s69_s17 = int_to_ptr.vmem [resolvable:$true] %s68_s17  ;;  %s90_s20 = int_to_ptr.hbm [resolvable:$true] %s89_s20 }
   0x9   :  { %71 = dma.hbm_to_vmem [thread:$0]  %s67_s15, 16, %s69_s17, [#allocation9]  }
   0xa   :  { %s986_s2 = smov [#allocation11]   ;;  %s31_s24 = sshll.u32 %s1128_s1, 4  ;;  %s32_s24 = int_to_ptr.hbm [resolvable:$true] %s31_s24 }
   0xb   :  { %s91_s21 = sshll.u32 %s986_s2, 4  ;;  %s987_s25 = smov 64   ;;  %s92_s21 = int_to_ptr.vmem [resolvable:$true] %s91_s21 }
   0xc   :  { %s988_s4 = smov 4   ;;  %s989_s26 = smov [#allocation2]  }
   0xd   :  { %97 = dma.hbm_to_vmem [thread:$0]  %s90_s20, 512, %s92_s21, [#allocation12], %s987_s25, %s987_s25, %s988_s4  }
   0xe   :  { %s33_s27 = sshll.u32 %s989_s26, 4  ;;  %s52_s7 = sshll.u32 %s1130_s3, 4  ;;  %s34_s27 = int_to_ptr.vmem [resolvable:$true] %s33_s27  ;;  %s53_s7 = int_to_ptr.hbm [resolvable:$true] %s52_s7 }
   0xf   :  { %36 = dma.hbm_to_vmem [thread:$0]  %s32_s24, 64, %s34_s27, [#allocation3]  }
  0x10   :  { %s79_s1 = sshll.u32 %s1133_s6, 4  ;;  %s990_s15 = smov [#allocation7]   ;;  %s80_s1 = int_to_ptr.hbm [resolvable:$true] %s79_s1 }
  0x11   :  { %s54_s16 = sshll.u32 %s990_s15, 4  ;;  %s991_s17 = smov [#allocation10]   ;;  %s55_s16 = int_to_ptr.vmem [resolvable:$true] %s54_s16 }
  0x12   :  { %60 = dma.hbm_to_vmem [thread:$0]  %s53_s7, 256, %s55_s16, [#allocation6], %s987_s25, %s987_s25, %s988_s4  }
  0x13   :  { %s81_s18 = sshll.u32 %s991_s17, 4  ;;  %s104_s3 = sshll.u32 %s1136_s9, 4  ;;  %s82_s18 = int_to_ptr.vmem [resolvable:$true] %s81_s18  ;;  %s105_s3 = int_to_ptr.hbm [resolvable:$true] %s104_s3 }
  0x14   :  { %84 = dma.hbm_to_vmem [thread:$0]  %s80_s1, 16, %s82_s18, [#allocation9]  }
  0x15   :  { %s119_s6 = sshll.u32 %s1138_s11, 4  ;;  %s992_s22 = smov [#allocation13]   ;;  %s120_s6 = int_to_ptr.hbm [resolvable:$true] %s119_s6 }
  0x16   :  { %s106_s23 = sshll.u32 %s992_s22, 4  ;;  %s993_s24 = smov [#allocation14]   ;;  %s107_s23 = int_to_ptr.vmem [resolvable:$true] %s106_s23 }
  0x17   :  { %112 = dma.hbm_to_vmem [thread:$0]  %s105_s3, 1024, %s107_s23, [#allocation12], %s987_s25, %s987_s25, %s988_s4  }
  0x18   :  { %s121_s26 = sshll.u32 %s993_s24, 4  ;;  %s994_s27 = smov 128   ;;  %s122_s26 = int_to_ptr.vmem [resolvable:$true] %s121_s26 }
  0x19   :  { %s995_s9 = smov 8  }
  0x1a   :  { %127 = dma.hbm_to_vmem [thread:$0]  %s120_s6, 2048, %s122_s26, [#allocation15], %s994_s27, %s994_s27, %s995_s9  }
  0x1b   :  { %972 = dma.done.wait [#allocation3], 64  }
  0x1c   :  { %973 = vsyncadd [#allocation3], 4294967232 }
  0x1d   :  { %974 = dma.done.wait [#allocation6], 272  }
  0x1e   :  { %975 = vsyncadd [#allocation6], 4294967024 }
  0x1f   :  { %976 = dma.done.wait [#allocation9], 32  }
  0x20   :  { %977 = vsyncadd [#allocation9], 4294967264 }
  0x21   :  { %978 = dma.done.wait [#allocation12], 1536  }
  0x22   :  { %979 = vsyncadd [#allocation12], 4294965760 }
  0x23   :  { %980 = dma.done.wait [#allocation15], 2048  }
  0x24   :  { %981 = vsyncadd [#allocation15], 4294965248  ;;  %v996_v0 = vmov 0   ;;  %v997_v1 = vmov 2   ;;  %v163_v2 = vld [vmem:[%s1127_s0] sm:$0xff]  ;;  %v998_v3 = vmov 1  }
  0x25   :  { %746 = vset.pattern.permute.xlu0 %v996_v0  ;;  %748 = vset.pattern.permute.xlu1 %v997_v1  ;;  %v999_v4 = vmov 3   ;;  %v698_v5 = vld [vmem:[#allocation7 + $0x8] sm:$0xff]  ;;  %v697_v6 = vld [vmem:[#allocation7] sm:$0xff]  ;;  %v164_v7 = vld [vmem:[#allocation2] sm:$0xf]  ;;  %vm220_vm0 = vcmask 261120  }
  0x26   :  { %168 = vperm.xlu0 %746, %v163_v2   ;;  %185 = vperm.xlu1 %748, %v163_v2   ;;  %v171_v10 = vperm.slane %v164_v7, 0  ;;  %v751_v11 = vld [vmem:[#allocation5] ss:$0 sm:$0xff]  ;;  %v181_v13 = vperm.slane %v164_v7, 1  ;;  %v188_v14 = vperm.slane %v164_v7, 2  ;;  %v195_v15 = vperm.slane %v164_v7, 3 }
  0x27   :  { %230 = vmatpush.bf16.msra.mxu2 %v698_v5  ;;  %v700_v27 = vld [vmem:[%s1132_s5 + $0x8] sm:$0xff]  ;;  %v699_v28 = vld [vmem:[%s1132_s5] sm:$0xff]  ;;  %v704_v29 = vld [vmem:[#allocation11 + $0x18] sm:$0xff]  ;;  %vm313_vm1 = vcmask 523264   ;;  %s1000_s15 = smov [#allocation16]  }
  0x28   :  { %268 = vmatpush.bf16.msra.mxu1 %v700_v27  ;;  %v703_v30 = vld [vmem:[#allocation11 + $0x10] sm:$0xff]  ;;  %v702_v31 = vld [vmem:[#allocation11 + $0x8] sm:$0xff]  ;;  %v752_v32 = vld [vmem:[#allocation8] ss:$0 sm:$0xff]  ;;  %s550_s16 = sshll.u32 %s1000_s15, 4  ;;  %s551_s16 = int_to_ptr.vmem [resolvable:$true] %s550_s16 }
  0x29   :  { %v701_v38 = vld [vmem:[#allocation11] sm:$0xff]  ;;  %v712_v39 = vld [vmem:[#allocation13 + $0x38] sm:$0xff]  ;;  %v711_v40 = vld [vmem:[#allocation13 + $0x30] sm:$0xff] }
  0x2a   :  { %400 = vmatpush.bf16.msra.mxu3 %v712_v39  ;;  %v710_v41 = vld [vmem:[#allocation13 + $0x28] sm:$0xff]  ;;  %v709_v42 = vld [vmem:[#allocation13 + $0x20] sm:$0xff]  ;;  %v708_v43 = vld [vmem:[#allocation13 + $0x18] sm:$0xff] }
  0x2b   :  { %231 = vmatpush.bf16.msra.mxu2 %v697_v6  ;;  %v707_v44 = vld [vmem:[#allocation13 + $0x10] sm:$0xff]  ;;  %v753_v45 = vld [vmem:[#allocation10] ss:$0 sm:$0xff]  ;;  %v706_v51 = vld [vmem:[#allocation13 + $0x8] sm:$0xff] }
  0x2c   :  { %269 = vmatpush.bf16.msra.mxu1 %v699_v28  ;;  %v705_v52 = vld [vmem:[#allocation13] sm:$0xff]  ;;  %v691_v53 = vld [vmem:[#allocation14 + $0x70] sm:$0xf]  ;;  %v728_v54 = vld [vmem:[#allocation14 + $0x74] sm:$0xf0] }
  0x2d   :  { %v727_v55 = vld [vmem:[#allocation14 + $0x74] sm:$0xf]  ;;  %v692_v56 = vor.u32 %v728_v54, %v691_v53  ;;  %v693_v57 = vld [vmem:[#allocation14 + $0x78] sm:$0xf0]  ;;  %v683_v58 = vld [vmem:[#allocation14 + $0x60] sm:$0xf] }
  0x2e   :  { %747 = vset.pattern.permute.xlu0 %v998_v3  ;;  %749 = vset.pattern.permute.xlu1 %v999_v4  ;;  %v726_v59 = vld [vmem:[#allocation14 + $0x64] sm:$0xf0]  ;;  %v696_v60 = vor.u32 %v727_v55, %v693_v57  ;;  %v725_v61 = vld [vmem:[#allocation14 + $0x64] sm:$0xf]  ;;  %v685_v62 = vld [vmem:[#allocation14 + $0x68] sm:$0xf0] }
  0x2f   :  { %178 = vperm.xlu0 %747, %v163_v2   ;;  %192 = vperm.xlu1 %749, %v163_v2   ;;  %v684_v63 = vor.u32 %v726_v59, %v683_v58  ;;  %v688_v0 = vor.u32 %v725_v61, %v685_v62  ;;  %v675_v1 = vld [vmem:[#allocation14 + $0x50] sm:$0xf]  ;;  %v724_v2 = vld [vmem:[#allocation14 + $0x54] sm:$0xf0]  ;;  %v723_v3 = vld [vmem:[#allocation14 + $0x54] sm:$0xf] }
  0x30   :  { %321 = vmatpush.bf16.msrb.mxu2 %v704_v29  ;;  %401 = vmatpush.bf16.msra.mxu3 %v711_v40  ;;  %v676_v5 = vor.u32 %v724_v2, %v675_v1  ;;  %v667_v7 = vld [vmem:[#allocation14 + $0x40] sm:$0xf]  ;;  %v713_v39 = vld [vmem:[#allocation14 + $0x4] sm:$0xf] }
  0x31   :  { %517 = vmatpush.bf16.msra.mxu0 %v692_v56  ;;  %530 = vmatpush.bf16.msrb.mxu1 %v696_v60 }
  0x34   :  { %322 = vmatpush.bf16.msrb.mxu2 %v703_v30  ;;  %402 = vmatpush.bf16.msra.mxu3 %v710_v41  ;;  %v637_v41 = vld [vmem:[#allocation14 + $0x8] sm:$0xf0] }
  0x35   :  { %518 = vmatpush.bf16.msra.mxu0 %v684_v63  ;;  %531 = vmatpush.bf16.msrb.mxu1 %v688_v0 }
  0x37   :  { %750 = vset.pattern.permute.xlu0 %v999_v4  ;;  %v677_v4 = vld [vmem:[#allocation14 + $0x58] sm:$0xf0] }
  0x38   :  { %323 = vmatpush.bf16.msrb.mxu2 %v702_v31  ;;  %403 = vmatpush.bf16.msra.mxu3 %v709_v42  ;;  %v680_v6 = vor.u32 %v723_v3, %v677_v4  ;;  %v643_v31 = vld [vmem:[#allocation14 + $0x10] sm:$0xf]  ;;  %v640_v42 = vor.u32 %v713_v39, %v637_v41 }
  0x39   :  { %519 = vmatpush.bf16.msra.mxu0 %v676_v5 }
  0x3a   :  { %532 = vmatpush.bf16.msrb.mxu1 %v680_v6 }
  0x3c   :  { %324 = vmatpush.bf16.msrb.mxu2 %v701_v38  ;;  %404 = vmatpush.bf16.msra.mxu3 %v708_v43  ;;  %v714_v38 = vld [vmem:[#allocation14 + $0x4] sm:$0xf0]  ;;  %v755_v43 = vld [vmem:[%s1137_s10] ss:$0 sm:$0xff]  ;;  %s552_s10 = sshll.u32 %s1140_s13, 4  ;;  %s553_s10 = int_to_ptr.hbm [resolvable:$true] %s552_s10 }
  0x40   :  { %405 = vmatpush.bf16.msra.mxu3 %v707_v44 }
  0x44   :  { %406 = vmatpush.bf16.msra.mxu3 %v706_v51 }
  0x48   :  { %407 = vmatpush.bf16.msra.mxu3 %v705_v52 }
  0x98   :  { %v169_v8 = vpop.permute.xlu0 %168  ;;  %v186_v9 = vpop.permute.xlu1 %185 }
  0x99   :  { %v172_v12 = vmul.f32 %v171_v10, %v169_v8  ;;  %v189_v20 = vmul.f32 %v188_v14, %v186_v9  ;;  %v722_v8 = vld [vmem:[#allocation14 + $0x44] sm:$0xf0]  ;;  %v721_v9 = vld [vmem:[#allocation14 + $0x44] sm:$0xf]  ;;  %v669_v10 = vld [vmem:[#allocation14 + $0x48] sm:$0xf0] }
  0x9a   :  { %v720_v14 = vld [vmem:[#allocation14 + $0x34] sm:$0xf0] }
  0x9b   :  { %v176_v18 = vadd.f32 %v751_v11, %v172_v12  ;;  %v668_v11 = vor.u32 %v722_v8, %v667_v7  ;;  %v672_v12 = vor.u32 %v721_v9, %v669_v10 }
  0x9d   :  { %520 = vmatpush.bf16.msra.mxu0 %v668_v11  ;;  %533 = vmatpush.bf16.msrb.mxu1 %v672_v12 }
  0xa1   :  { %v179_v16 = vpop.permute.xlu0 %178  ;;  %v193_v17 = vpop.permute.xlu1 %192 }
  0xa2   :  { %v182_v19 = vmul.f32 %v181_v13, %v179_v16  ;;  %v196_v22 = vmul.f32 %v195_v15, %v193_v17  ;;  %v659_v13 = vld [vmem:[#allocation14 + $0x30] sm:$0xf]  ;;  %v719_v15 = vld [vmem:[#allocation14 + $0x34] sm:$0xf]  ;;  %v661_v16 = vld [vmem:[#allocation14 + $0x38] sm:$0xf0] }
  0xa3   :  { %v660_v17 = vor.u32 %v720_v14, %v659_v13 }
  0xa4   :  { %v183_v21 = vadd.f32 %v182_v19, %v176_v18  ;;  %v664_v18 = vor.u32 %v719_v15, %v661_v16  ;;  %v651_v19 = vld [vmem:[#allocation14 + $0x20] sm:$0xf] }
  0xa5   :  { %521 = vmatpush.bf16.msra.mxu0 %v660_v17 }
  0xa6   :  { %v190_v23 = vadd.f32 %v189_v20, %v183_v21  ;;  %v718_v20 = vld [vmem:[#allocation14 + $0x24] sm:$0xf0]  ;;  %v717_v21 = vld [vmem:[#allocation14 + $0x24] sm:$0xf]  ;;  %534 = vmatpush.bf16.msrb.mxu1 %v664_v18 }
  0xa8   :  { %v197_v24 = vadd.f32 %v196_v22, %v190_v23  ;;  %v653_v22 = vld [vmem:[#allocation14 + $0x28] sm:$0xf0]  ;;  %v652_v23 = vor.u32 %v718_v20, %v651_v19 }
  0xaa   :  { %v198_v25 = vmax.f32 %v197_v24, 0.0  ;;  %v656_v24 = vor.u32 %v717_v21, %v653_v22  ;;  %522 = vmatpush.bf16.msra.mxu0 %v652_v23 }
  0xac   :  { %v199_v26 = vpack.c.bf16 %v198_v25, %v198_v25  ;;  %v754_v25 = vld [vmem:[%s1135_s8] ss:$0 sm:$0xff]  ;;  %535 = vmatpush.bf16.msrb.mxu1 %v656_v24 }
  0xae   :  { %574 = vmatmul.msk.bf16.vlgmr.msra.gmra.mxu2 %vm220_vm0, %v199_v26 }
 0x131   :  { %v233_v33 = vpop.f32.mrf.mxu2 }
 0x132   :  { %v234_v34 = vadd.f32 %v752_v32, %v233_v33  ;;  %v716_v32 = vld [vmem:[#allocation14 + $0x14] sm:$0xf0]  ;;  %v715_v33 = vld [vmem:[#allocation14 + $0x14] sm:$0xf] }
 0x134   :  { %v237_v35 = vmax.f32 %v234_v34, 0.0  ;;  %v644_v34 = vor.u32 %v716_v32, %v643_v31 }
 0x136   :  { %v238_v36 = vpack.c.bf16 %v237_v35, %v237_v35  ;;  %v645_v35 = vld [vmem:[#allocation14 + $0x18] sm:$0xf0]  ;;  %523 = vmatpush.bf16.msra.mxu0 %v644_v34 }
 0x138   :  { %583 = vmatmul.msk.bf16.vlgmr.msra.gmra.mxu1 %vm220_vm0, %v238_v36  ;;  %v648_v36 = vor.u32 %v715_v33, %v645_v35 }
 0x139   :  { %v235_v37 = vpop.f32.mrf.mxu2 }
 0x13a   :  { %536 = vmatpush.bf16.msrb.mxu1 %v648_v36  ;;  %v635_v37 = vld [vmem:[#allocation14] sm:$0xf] }
 0x13b   :  { %v636_v40 = vor.u32 %v714_v38, %v635_v37 }
 0x13d   :  { %524 = vmatpush.bf16.msra.mxu0 %v636_v40 }
 0x13e   :  { %537 = vmatpush.bf16.msrb.mxu1 %v640_v42 }
 0x1b5   :  { %v271_v46 = vpop.f32.mrf.mxu1 }
 0x1b6   :  { %v272_v47 = vadd.f32 %v753_v45, %v271_v46 }
 0x1b8   :  { %v275_v48 = vmax.f32 %v272_v47, 0.0 }
 0x1ba   :  { %v276_v49 = vpack.c.bf16 %v275_v48, %v275_v48 }
 0x1bc   :  { %600 = vmatmul.msk.bf16.vlgmr.msrb.gmra.mxu2 %vm313_vm1, %v276_v49  ;;  %v431_v49 = vld [vmem:[%s1139_s12] sm:$0x3] }
 0x1bd   :  { %v273_v50 = vpop.f32.mrf.mxu1  ;;  %v434_v51 = vperm.slane %v431_v49, 1 }
 0x1be   :  { %v433_v50 = vperm.slane %v431_v49, 0 }
 0x23f   :  { %v326_v26 = vpop.f32.mrf.mxu2 }
 0x240   :  { %v327_v27 = vadd.f32 %v754_v25, %v326_v26 }
 0x242   :  { %v330_v28 = vmax.f32 %v327_v27, 0.0 }
 0x244   :  { %v331_v29 = vpack.c.bf16 %v330_v28, %v330_v28 }
 0x246   :  { %408 = vmatmul.bf16.vlgmr.msra.gmra.mxu3 %v331_v29 }
 0x247   :  { %v328_v30 = vpop.f32.mrf.mxu2 }
 0x2c9   :  { %v409_v44 = vpop.f32.mrf.mxu3 }
 0x2ca   :  { %v410_v45 = vadd.f32 %v755_v43, %v409_v44 }
 0x2cc   :  { %v413_v46 = vmax.f32 %v410_v45, 0.0 }
 0x2ce   :  { %v414_v47 = vpack.c.bf16 %v413_v46, %v413_v46 }
 0x2d0   :  { %525 = vmatmul.bf16.vlgmr.msra.gmra.mxu0 %v414_v47  ;;  %538 = vmatmul.bf16.vlgmr.msrb.gmra.mxu1 %v414_v47 }
 0x2d1   :  { %v411_v48 = vpop.f32.mrf.mxu3 }
 0x34d   :  { %v526_v52 = vpop.f32.mrf.mxu0  ;;  %v539_v53 = vpop.f32.mrf.mxu1 }
 0x34e   :  { %v527_v54 = vadd.f32 %v526_v52, %v433_v50  ;;  %v540_v55 = vadd.f32 %v539_v53, %v434_v51 }
 0x350   :  { %v543_v56 = vpack.c.bf16 %v540_v55, %v527_v54 }
 0x352   :  { %544 = vst [vmem:[#allocation16] sm:$0xff] %v543_v56 }
 0x353   :  { %555 = dma.vmem_to_hbm [thread:$0]  %s551_s16, 128, %s553_s10, [#allocation4]  }
 0x355   :  { %v528_v57 = vpop.f32.mrf.mxu0  ;;  %v541_v58 = vpop.f32.mrf.mxu1 }
 0x356   :  { %982 = dma.done.wait [#allocation4], 128  }
 0x357   :  { %983 = vsyncadd [#allocation4], 4294967168 }
 0x358   :  { %560 = vsyncpa [#allocation3], 1 }
 0x359   :  { %561 = vsyncpa [#allocation6], 1 }
 0x35a   :  { %562 = vsyncpa [#allocation9], 1 }
 0x35b   :  { %563 = vsyncpa [#allocation12], 1 }
 0x35c   :  { %564 = vsyncpa [#allocation15], 1 }
 0x35d   :  { %565 = vsyncpa [#allocation4], 1 }

</bundles_post_ra>
